<compile_context>
chip_gen: v6e
topology: v6e:2x2x1
jax: 0.10.0
libtpu: 0.0.40
codegen_flags: <defaults>
</compile_context>

<pallas_src>
import functools

import jax
import jax.numpy as jnp
from jax.experimental import pallas as pl
from jax.experimental.pallas import tpu as pltpu

# ---- synthetic "synonym_dict" configuration (deterministic, built in-script) ----
VOCAB = 16      # token ids are in [0, VOCAB)
MAX_SYN = 4     # each token has 4 synonyms in the dict
THRES = 3       # only the first `thres` synonyms are eligible (dict[...][:thres])
PROB = 0.5      # replacement probability

WIDTH = 512       # lane-dense last dim (multiple of 128)
TILE_ROWS = 128   # rows per grid step -> 128*512*4 B = 256 KiB int32 tile


def _build_synonym_tables():
    """Deterministic dense synonym table: synonym k of token c is (c + 1 + k) % VOCAB."""
    toks = jnp.arange(VOCAB, dtype=jnp.int32)[:, None]
    ks = jnp.arange(MAX_SYN, dtype=jnp.int32)[None, :]
    table = ((toks + 1 + ks) % VOCAB).astype(jnp.int32)   # (V, MAX_SYN)
    cnt = min(MAX_SYN, THRES)                             # uniform eligible count per token
    # Pre-slice to the eligible synonyms only -> flat (V*cnt,) table.
    # For genuinely ragged dictionaries a per-token count table would be needed here.
    table_elig = table[:, :cnt].reshape(-1)
    return table_elig, cnt


def _fmix32(u):
    """murmur3 32-bit finalizer (uint32 in / uint32 out), pure VPU integer ops."""
    u = u ^ (u >> 16)
    u = u * jnp.uint32(0x85EBCA6B)
    u = u ^ (u >> 13)
    u = u * jnp.uint32(0xC2B2AE35)
    u = u ^ (u >> 16)
    return u


def _replace_kernel(seed_ref, table_ref, x_ref, o_ref, *, prob, cnt):
    x = x_ref[...]                                   # (TILE_ROWS, WIDTH) int32 tokens
    rows, width = x.shape
    step = pl.program_id(0)

    # Global element index -> identical random stream regardless of tiling.
    row = jax.lax.broadcasted_iota(jnp.int32, x.shape, 0)
    col = jax.lax.broadcasted_iota(jnp.int32, x.shape, 1)
    idx = (step * rows + row) * width + col

    # Stateless hash: one 32-bit word per element; seed decorrelated via golden-ratio mix.
    seed_mix = seed_ref[0].astype(jnp.uint32) * jnp.uint32(0x9E3779B9)
    h = _fmix32(idx.astype(jnp.uint32) ^ seed_mix)

    # Coin flip: low 24 bits vs. precomputed integer threshold (no float math).
    coin_thresh = jnp.int32(min(int(round(prob * (1 << 24))), 1 << 24))
    coin_bits = (h & jnp.uint32(0x00FFFFFF)).astype(jnp.int32)
    replace = coin_bits < coin_thresh

    # Synonym pick j in [0, cnt): top 8 bits of the same hash word, integer mulhi-style.
    pick_bits = (h >> 24).astype(jnp.int32)          # [0, 256)
    j = (pick_bits * jnp.int32(cnt)) >> 8            # [0, cnt)

    # Flat index into the eligible-synonym table; clamp guards out-of-range tokens.
    x_c = jnp.clip(x, 0, VOCAB - 1)
    gidx = x_c * jnp.int32(cnt) + j                  # [0, VOCAB*cnt)

    # Gather from the tiny SMEM table via a compare/select chain (V*cnt entries).
    syn = jnp.zeros_like(x)
    for k in range(VOCAB * cnt):
        syn = jnp.where(gidx == k, table_ref[k], syn)

    o_ref[...] = jnp.where(replace, syn, x)


def replace_synonym(x, seed=0, prob=PROB):
    """x: integer array of any shape with values in [0, VOCAB). Returns int32 array, same shape.

    Values are < VOCAB so int32 is lossless; widen to int64 at the host boundary
    if a LongTensor-exact dtype is required (avoids a whole-tensor HBM repass here).
    """
    table_elig, cnt = _build_synonym_tables()
    x_i32 = x.astype(jnp.int32)
    x_shape = x_i32.shape
    n = int(x_i32.size)

    width = WIDTH
    rows_needed = -(-n // width)
    tile_rows = min(TILE_ROWS, ((rows_needed + 7) // 8) * 8)
    rows = ((rows_needed + tile_rows - 1) // tile_rows) * tile_rows
    padded = rows * width

    x_flat = jnp.pad(x_i32.reshape(-1), (0, padded - n))
    x2d = x_flat.reshape(rows, width)
    seed_arr = jnp.asarray([seed], jnp.int32)
    grid = (rows // tile_rows,)

    out = pl.pallas_call(
        functools.partial(_replace_kernel, prob=float(prob), cnt=cnt),
        out_shape=jax.ShapeDtypeStruct((rows, width), jnp.int32),
        grid=grid,
        in_specs=[
            pl.BlockSpec(memory_space=pltpu.SMEM),                    # seed scalar
            pl.BlockSpec(memory_space=pltpu.SMEM),                    # eligible synonym table
            pl.BlockSpec((tile_rows, width), lambda i: (i, 0)),       # tokens
        ],
        out_specs=pl.BlockSpec((tile_rows, width), lambda i: (i, 0)),
        compiler_params=pltpu.CompilerParams(
            dimension_semantics=("parallel",),
        ),
    )(seed_arr, table_elig, x2d)

    return out.reshape(-1)[:n].reshape(x_shape)


if __name__ == "__main__":
    key = jax.random.PRNGKey(0)
    # token tensor analogous to the module's input, e.g. a (B, C, H, W) id map
    x = jax.random.randint(key, (2, 4, 16, 16), minval=0, maxval=VOCAB, dtype=jnp.int32)

    y = replace_synonym(x, seed=0, prob=PROB)
    y = jax.block_until_ready(y)

    # sanity: same shape, valid token ids, and every element is either the original
    # token or one of its top-THRES synonyms ((c+1..c+THRES) % VOCAB in this dict).
    assert y.shape == x.shape
    assert bool(jnp.all((y >= 0) & (y < VOCAB)))
    diff = (y.astype(jnp.int32) - x) % VOCAB
    assert bool(jnp.all((diff == 0) | ((diff >= 1) & (diff <= THRES))))
    assert bool(jnp.any(diff != 0)) and bool(jnp.any(diff == 0))  # both branches exercised
    print("KERNEL_OK")
</pallas_src>

<mosaic_0001>
module attributes {stable_mosaic.version = 11 : i64} {
  func.func @_replace_kernel(%arg0: i32, %arg1: memref<1xi32, #tpu.memory_space<smem>>, %arg2: memref<48xi32, #tpu.memory_space<smem>>, %arg3: memref<8x512xi32, #tpu.memory_space<vmem>>, %arg4: memref<8x512xi32, #tpu.memory_space<vmem>>) attributes {dimension_semantics = [#tpu.dimension_semantics<parallel>], iteration_bounds = array<i64: 1>, scalar_prefetch = 0 : i64, scratch_operands = 0 : i64, tpu.core_type = #tpu.core_type<tc>, window_params = [{transform_indices = @transform_0, window_bounds = array<i64: 1>}, {transform_indices = @transform_1, window_bounds = array<i64: 48>}, {transform_indices = @transform_2, window_bounds = array<i64: 8, 512>}, {transform_indices = @transform_3, window_bounds = array<i64: 8, 512>}]} {
    %c0 = arith.constant 0 : index
    %c0_0 = arith.constant 0 : index
    %0 = vector.load %arg3[%c0, %c0_0] : memref<8x512xi32, #tpu.memory_space<vmem>>, vector<8x512xi32>
    %1 = tpu.iota {dimensions = array<i32: 0>} : vector<8x512xi32>
    %2 = tpu.iota {dimensions = array<i32: 1>} : vector<8x512xi32>
    %c8_i32 = arith.constant 8 : i32
    %3 = arith.muli %arg0, %c8_i32 : i32
    %4 = vector.broadcast %3 : i32 to vector<8x512xi32>
    %5 = arith.addi %4, %1 : vector<8x512xi32>
    %c512_i32 = arith.constant 512 : i32
    %6 = vector.broadcast %c512_i32 : i32 to vector<8x512xi32>
    %7 = arith.muli %5, %6 : vector<8x512xi32>
    %8 = arith.addi %7, %2 : vector<8x512xi32>
    %c0_1 = arith.constant 0 : index
    %9 = memref.load %arg1[%c0_1] : memref<1xi32, #tpu.memory_space<smem>>
    %c-1640531527_i32 = arith.constant -1640531527 : i32
    %10 = arith.muli %9, %c-1640531527_i32 : i32
    %11 = vector.broadcast %10 : i32 to vector<8x512xi32>
    %12 = arith.xori %8, %11 : vector<8x512xi32>
    %c16_i32 = arith.constant 16 : i32
    %13 = vector.broadcast %c16_i32 : i32 to vector<8x512xi32>
    %14 = arith.shrui %12, %13 : vector<8x512xi32>
    %15 = arith.xori %12, %14 : vector<8x512xi32>
    %c-2048144789_i32 = arith.constant -2048144789 : i32
    %16 = vector.broadcast %c-2048144789_i32 : i32 to vector<8x512xi32>
    %17 = arith.muli %15, %16 : vector<8x512xi32>
    %c13_i32 = arith.constant 13 : i32
    %18 = vector.broadcast %c13_i32 : i32 to vector<8x512xi32>
    %19 = arith.shrui %17, %18 : vector<8x512xi32>
    %20 = arith.xori %17, %19 : vector<8x512xi32>
    %c-1028477387_i32 = arith.constant -1028477387 : i32
    %21 = vector.broadcast %c-1028477387_i32 : i32 to vector<8x512xi32>
    %22 = arith.muli %20, %21 : vector<8x512xi32>
    %c16_i32_2 = arith.constant 16 : i32
    %23 = vector.broadcast %c16_i32_2 : i32 to vector<8x512xi32>
    %24 = arith.shrui %22, %23 : vector<8x512xi32>
    %25 = arith.xori %22, %24 : vector<8x512xi32>
    %c16777215_i32 = arith.constant 16777215 : i32
    %26 = vector.broadcast %c16777215_i32 : i32 to vector<8x512xi32>
    %27 = arith.andi %25, %26 : vector<8x512xi32>
    %c8388608_i32 = arith.constant 8388608 : i32
    %28 = vector.broadcast %c8388608_i32 : i32 to vector<8x512xi32>
    %29 = arith.cmpi slt, %27, %28 : vector<8x512xi32>
    %c24_i32 = arith.constant 24 : i32
    %30 = vector.broadcast %c24_i32 : i32 to vector<8x512xi32>
    %31 = arith.shrui %25, %30 : vector<8x512xi32>
    %c3_i32 = arith.constant 3 : i32
    %32 = vector.broadcast %c3_i32 : i32 to vector<8x512xi32>
    %33 = arith.muli %31, %32 : vector<8x512xi32>
    %c8_i32_3 = arith.constant 8 : i32
    %34 = vector.broadcast %c8_i32_3 : i32 to vector<8x512xi32>
    %35 = arith.shrsi %33, %34 : vector<8x512xi32>
    %c0_i32 = arith.constant 0 : i32
    %c15_i32 = arith.constant 15 : i32
    %36 = vector.broadcast %c0_i32 : i32 to vector<8x512xi32>
    %37 = arith.maxsi %36, %0 : vector<8x512xi32>
    %38 = vector.broadcast %c15_i32 : i32 to vector<8x512xi32>
    %39 = arith.minsi %38, %37 : vector<8x512xi32>
    %c3_i32_4 = arith.constant 3 : i32
    %40 = vector.broadcast %c3_i32_4 : i32 to vector<8x512xi32>
    %41 = arith.muli %39, %40 : vector<8x512xi32>
    %42 = arith.addi %41, %35 : vector<8x512xi32>
    %c0_i32_5 = arith.constant 0 : i32
    %43 = vector.broadcast %c0_i32_5 : i32 to vector<8x512xi32>
    %c0_i32_6 = arith.constant 0 : i32
    %44 = vector.broadcast %c0_i32_6 : i32 to vector<8x512xi32>
    %45 = arith.cmpi eq, %42, %44 : vector<8x512xi32>
    %c0_7 = arith.constant 0 : index
    %46 = memref.load %arg2[%c0_7] : memref<48xi32, #tpu.memory_space<smem>>
    %47 = vector.broadcast %46 : i32 to vector<8x512xi32>
    %48 = arith.select %45, %47, %43 : vector<8x512xi1>, vector<8x512xi32>
    %c1_i32 = arith.constant 1 : i32
    %49 = vector.broadcast %c1_i32 : i32 to vector<8x512xi32>
    %50 = arith.cmpi eq, %42, %49 : vector<8x512xi32>
    %c1 = arith.constant 1 : index
    %51 = memref.load %arg2[%c1] : memref<48xi32, #tpu.memory_space<smem>>
    %52 = vector.broadcast %51 : i32 to vector<8x512xi32>
    %53 = arith.select %50, %52, %48 : vector<8x512xi1>, vector<8x512xi32>
    %c2_i32 = arith.constant 2 : i32
    %54 = vector.broadcast %c2_i32 : i32 to vector<8x512xi32>
    %55 = arith.cmpi eq, %42, %54 : vector<8x512xi32>
    %c2 = arith.constant 2 : index
    %56 = memref.load %arg2[%c2] : memref<48xi32, #tpu.memory_space<smem>>
    %57 = vector.broadcast %56 : i32 to vector<8x512xi32>
    %58 = arith.select %55, %57, %53 : vector<8x512xi1>, vector<8x512xi32>
    %c3_i32_8 = arith.constant 3 : i32
    %59 = vector.broadcast %c3_i32_8 : i32 to vector<8x512xi32>
    %60 = arith.cmpi eq, %42, %59 : vector<8x512xi32>
    %c3 = arith.constant 3 : index
    %61 = memref.load %arg2[%c3] : memref<48xi32, #tpu.memory_space<smem>>
    %62 = vector.broadcast %61 : i32 to vector<8x512xi32>
    %63 = arith.select %60, %62, %58 : vector<8x512xi1>, vector<8x512xi32>
    %c4_i32 = arith.constant 4 : i32
    %64 = vector.broadcast %c4_i32 : i32 to vector<8x512xi32>
    %65 = arith.cmpi eq, %42, %64 : vector<8x512xi32>
    %c4 = arith.constant 4 : index
    %66 = memref.load %arg2[%c4] : memref<48xi32, #tpu.memory_space<smem>>
    %67 = vector.broadcast %66 : i32 to vector<8x512xi32>
    %68 = arith.select %65, %67, %63 : vector<8x512xi1>, vector<8x512xi32>
    %c5_i32 = arith.constant 5 : i32
    %69 = vector.broadcast %c5_i32 : i32 to vector<8x512xi32>
    %70 = arith.cmpi eq, %42, %69 : vector<8x512xi32>
    %c5 = arith.constant 5 : index
    %71 = memref.load %arg2[%c5] : memref<48xi32, #tpu.memory_space<smem>>
    %72 = vector.broadcast %71 : i32 to vector<8x512xi32>
    %73 = arith.select %70, %72, %68 : vector<8x512xi1>, vector<8x512xi32>
    %c6_i32 = arith.constant 6 : i32
    %74 = vector.broadcast %c6_i32 : i32 to vector<8x512xi32>
    %75 = arith.cmpi eq, %42, %74 : vector<8x512xi32>
    %c6 = arith.constant 6 : index
    %76 = memref.load %arg2[%c6] : memref<48xi32, #tpu.memory_space<smem>>
    %77 = vector.broadcast %76 : i32 to vector<8x512xi32>
    %78 = arith.select %75, %77, %73 : vector<8x512xi1>, vector<8x512xi32>
    %c7_i32 = arith.constant 7 : i32
    %79 = vector.broadcast %c7_i32 : i32 to vector<8x512xi32>
    %80 = arith.cmpi eq, %42, %79 : vector<8x512xi32>
    %c7 = arith.constant 7 : index
    %81 = memref.load %arg2[%c7] : memref<48xi32, #tpu.memory_space<smem>>
    %82 = vector.broadcast %81 : i32 to vector<8x512xi32>
    %83 = arith.select %80, %82, %78 : vector<8x512xi1>, vector<8x512xi32>
    %c8_i32_9 = arith.constant 8 : i32
    %84 = vector.broadcast %c8_i32_9 : i32 to vector<8x512xi32>
    %85 = arith.cmpi eq, %42, %84 : vector<8x512xi32>
    %c8 = arith.constant 8 : index
    %86 = memref.load %arg2[%c8] : memref<48xi32, #tpu.memory_space<smem>>
    %87 = vector.broadcast %86 : i32 to vector<8x512xi32>
    %88 = arith.select %85, %87, %83 : vector<8x512xi1>, vector<8x512xi32>
    %c9_i32 = arith.constant 9 : i32
    %89 = vector.broadcast %c9_i32 : i32 to vector<8x512xi32>
    %90 = arith.cmpi eq, %42, %89 : vector<8x512xi32>
    %c9 = arith.constant 9 : index
    %91 = memref.load %arg2[%c9] : memref<48xi32, #tpu.memory_space<smem>>
    %92 = vector.broadcast %91 : i32 to vector<8x512xi32>
    %93 = arith.select %90, %92, %88 : vector<8x512xi1>, vector<8x512xi32>
    %c10_i32 = arith.constant 10 : i32
    %94 = vector.broadcast %c10_i32 : i32 to vector<8x512xi32>
    %95 = arith.cmpi eq, %42, %94 : vector<8x512xi32>
    %c10 = arith.constant 10 : index
    %96 = memref.load %arg2[%c10] : memref<48xi32, #tpu.memory_space<smem>>
    %97 = vector.broadcast %96 : i32 to vector<8x512xi32>
    %98 = arith.select %95, %97, %93 : vector<8x512xi1>, vector<8x512xi32>
    %c11_i32 = arith.constant 11 : i32
    %99 = vector.broadcast %c11_i32 : i32 to vector<8x512xi32>
    %100 = arith.cmpi eq, %42, %99 : vector<8x512xi32>
    %c11 = arith.constant 11 : index
    %101 = memref.load %arg2[%c11] : memref<48xi32, #tpu.memory_space<smem>>
    %102 = vector.broadcast %101 : i32 to vector<8x512xi32>
    %103 = arith.select %100, %102, %98 : vector<8x512xi1>, vector<8x512xi32>
    %c12_i32 = arith.constant 12 : i32
    %104 = vector.broadcast %c12_i32 : i32 to vector<8x512xi32>
    %105 = arith.cmpi eq, %42, %104 : vector<8x512xi32>
    %c12 = arith.constant 12 : index
    %106 = memref.load %arg2[%c12] : memref<48xi32, #tpu.memory_space<smem>>
    %107 = vector.broadcast %106 : i32 to vector<8x512xi32>
    %108 = arith.select %105, %107, %103 : vector<8x512xi1>, vector<8x512xi32>
    %c13_i32_10 = arith.constant 13 : i32
    %109 = vector.broadcast %c13_i32_10 : i32 to vector<8x512xi32>
    %110 = arith.cmpi eq, %42, %109 : vector<8x512xi32>
    %c13 = arith.constant 13 : index
    %111 = memref.load %arg2[%c13] : memref<48xi32, #tpu.memory_space<smem>>
    %112 = vector.broadcast %111 : i32 to vector<8x512xi32>
    %113 = arith.select %110, %112, %108 : vector<8x512xi1>, vector<8x512xi32>
    %c14_i32 = arith.constant 14 : i32
    %114 = vector.broadcast %c14_i32 : i32 to vector<8x512xi32>
    %115 = arith.cmpi eq, %42, %114 : vector<8x512xi32>
    %c14 = arith.constant 14 : index
    %116 = memref.load %arg2[%c14] : memref<48xi32, #tpu.memory_space<smem>>
    %117 = vector.broadcast %116 : i32 to vector<8x512xi32>
    %118 = arith.select %115, %117, %113 : vector<8x512xi1>, vector<8x512xi32>
    %c15_i32_11 = arith.constant 15 : i32
    %119 = vector.broadcast %c15_i32_11 : i32 to vector<8x512xi32>
    %120 = arith.cmpi eq, %42, %119 : vector<8x512xi32>
    %c15 = arith.constant 15 : index
    %121 = memref.load %arg2[%c15] : memref<48xi32, #tpu.memory_space<smem>>
    %122 = vector.broadcast %121 : i32 to vector<8x512xi32>
    %123 = arith.select %120, %122, %118 : vector<8x512xi1>, vector<8x512xi32>
    %c16_i32_12 = arith.constant 16 : i32
    %124 = vector.broadcast %c16_i32_12 : i32 to vector<8x512xi32>
    %125 = arith.cmpi eq, %42, %124 : vector<8x512xi32>
    %c16 = arith.constant 16 : index
    %126 = memref.load %arg2[%c16] : memref<48xi32, #tpu.memory_space<smem>>
    %127 = vector.broadcast %126 : i32 to vector<8x512xi32>
    %128 = arith.select %125, %127, %123 : vector<8x512xi1>, vector<8x512xi32>
    %c17_i32 = arith.constant 17 : i32
    %129 = vector.broadcast %c17_i32 : i32 to vector<8x512xi32>
    %130 = arith.cmpi eq, %42, %129 : vector<8x512xi32>
    %c17 = arith.constant 17 : index
    %131 = memref.load %arg2[%c17] : memref<48xi32, #tpu.memory_space<smem>>
    %132 = vector.broadcast %131 : i32 to vector<8x512xi32>
    %133 = arith.select %130, %132, %128 : vector<8x512xi1>, vector<8x512xi32>
    %c18_i32 = arith.constant 18 : i32
    %134 = vector.broadcast %c18_i32 : i32 to vector<8x512xi32>
    %135 = arith.cmpi eq, %42, %134 : vector<8x512xi32>
    %c18 = arith.constant 18 : index
    %136 = memref.load %arg2[%c18] : memref<48xi32, #tpu.memory_space<smem>>
    %137 = vector.broadcast %136 : i32 to vector<8x512xi32>
    %138 = arith.select %135, %137, %133 : vector<8x512xi1>, vector<8x512xi32>
    %c19_i32 = arith.constant 19 : i32
    %139 = vector.broadcast %c19_i32 : i32 to vector<8x512xi32>
    %140 = arith.cmpi eq, %42, %139 : vector<8x512xi32>
    %c19 = arith.constant 19 : index
    %141 = memref.load %arg2[%c19] : memref<48xi32, #tpu.memory_space<smem>>
    %142 = vector.broadcast %141 : i32 to vector<8x512xi32>
    %143 = arith.select %140, %142, %138 : vector<8x512xi1>, vector<8x512xi32>
    %c20_i32 = arith.constant 20 : i32
    %144 = vector.broadcast %c20_i32 : i32 to vector<8x512xi32>
    %145 = arith.cmpi eq, %42, %144 : vector<8x512xi32>
    %c20 = arith.constant 20 : index
    %146 = memref.load %arg2[%c20] : memref<48xi32, #tpu.memory_space<smem>>
    %147 = vector.broadcast %146 : i32 to vector<8x512xi32>
    %148 = arith.select %145, %147, %143 : vector<8x512xi1>, vector<8x512xi32>
    %c21_i32 = arith.constant 21 : i32
    %149 = vector.broadcast %c21_i32 : i32 to vector<8x512xi32>
    %150 = arith.cmpi eq, %42, %149 : vector<8x512xi32>
    %c21 = arith.constant 21 : index
    %151 = memref.load %arg2[%c21] : memref<48xi32, #tpu.memory_space<smem>>
    %152 = vector.broadcast %151 : i32 to vector<8x512xi32>
    %153 = arith.select %150, %152, %148 : vector<8x512xi1>, vector<8x512xi32>
    %c22_i32 = arith.constant 22 : i32
    %154 = vector.broadcast %c22_i32 : i32 to vector<8x512xi32>
    %155 = arith.cmpi eq, %42, %154 : vector<8x512xi32>
    %c22 = arith.constant 22 : index
    %156 = memref.load %arg2[%c22] : memref<48xi32, #tpu.memory_space<smem>>
    %157 = vector.broadcast %156 : i32 to vector<8x512xi32>
    %158 = arith.select %155, %157, %153 : vector<8x512xi1>, vector<8x512xi32>
    %c23_i32 = arith.constant 23 : i32
    %159 = vector.broadcast %c23_i32 : i32 to vector<8x512xi32>
    %160 = arith.cmpi eq, %42, %159 : vector<8x512xi32>
    %c23 = arith.constant 23 : index
    %161 = memref.load %arg2[%c23] : memref<48xi32, #tpu.memory_space<smem>>
    %162 = vector.broadcast %161 : i32 to vector<8x512xi32>
    %163 = arith.select %160, %162, %158 : vector<8x512xi1>, vector<8x512xi32>
    %c24_i32_13 = arith.constant 24 : i32
    %164 = vector.broadcast %c24_i32_13 : i32 to vector<8x512xi32>
    %165 = arith.cmpi eq, %42, %164 : vector<8x512xi32>
    %c24 = arith.constant 24 : index
    %166 = memref.load %arg2[%c24] : memref<48xi32, #tpu.memory_space<smem>>
    %167 = vector.broadcast %166 : i32 to vector<8x512xi32>
    %168 = arith.select %165, %167, %163 : vector<8x512xi1>, vector<8x512xi32>
    %c25_i32 = arith.constant 25 : i32
    %169 = vector.broadcast %c25_i32 : i32 to vector<8x512xi32>
    %170 = arith.cmpi eq, %42, %169 : vector<8x512xi32>
    %c25 = arith.constant 25 : index
    %171 = memref.load %arg2[%c25] : memref<48xi32, #tpu.memory_space<smem>>
    %172 = vector.broadcast %171 : i32 to vector<8x512xi32>
    %173 = arith.select %170, %172, %168 : vector<8x512xi1>, vector<8x512xi32>
    %c26_i32 = arith.constant 26 : i32
    %174 = vector.broadcast %c26_i32 : i32 to vector<8x512xi32>
    %175 = arith.cmpi eq, %42, %174 : vector<8x512xi32>
    %c26 = arith.constant 26 : index
    %176 = memref.load %arg2[%c26] : memref<48xi32, #tpu.memory_space<smem>>
    %177 = vector.broadcast %176 : i32 to vector<8x512xi32>
    %178 = arith.select %175, %177, %173 : vector<8x512xi1>, vector<8x512xi32>
    %c27_i32 = arith.constant 27 : i32
    %179 = vector.broadcast %c27_i32 : i32 to vector<8x512xi32>
    %180 = arith.cmpi eq, %42, %179 : vector<8x512xi32>
    %c27 = arith.constant 27 : index
    %181 = memref.load %arg2[%c27] : memref<48xi32, #tpu.memory_space<smem>>
    %182 = vector.broadcast %181 : i32 to vector<8x512xi32>
    %183 = arith.select %180, %182, %178 : vector<8x512xi1>, vector<8x512xi32>
    %c28_i32 = arith.constant 28 : i32
    %184 = vector.broadcast %c28_i32 : i32 to vector<8x512xi32>
    %185 = arith.cmpi eq, %42, %184 : vector<8x512xi32>
    %c28 = arith.constant 28 : index
    %186 = memref.load %arg2[%c28] : memref<48xi32, #tpu.memory_space<smem>>
    %187 = vector.broadcast %186 : i32 to vector<8x512xi32>
    %188 = arith.select %185, %187, %183 : vector<8x512xi1>, vector<8x512xi32>
    %c29_i32 = arith.constant 29 : i32
    %189 = vector.broadcast %c29_i32 : i32 to vector<8x512xi32>
    %190 = arith.cmpi eq, %42, %189 : vector<8x512xi32>
    %c29 = arith.constant 29 : index
    %191 = memref.load %arg2[%c29] : memref<48xi32, #tpu.memory_space<smem>>
    %192 = vector.broadcast %191 : i32 to vector<8x512xi32>
    %193 = arith.select %190, %192, %188 : vector<8x512xi1>, vector<8x512xi32>
    %c30_i32 = arith.constant 30 : i32
    %194 = vector.broadcast %c30_i32 : i32 to vector<8x512xi32>
    %195 = arith.cmpi eq, %42, %194 : vector<8x512xi32>
    %c30 = arith.constant 30 : index
    %196 = memref.load %arg2[%c30] : memref<48xi32, #tpu.memory_space<smem>>
    %197 = vector.broadcast %196 : i32 to vector<8x512xi32>
    %198 = arith.select %195, %197, %193 : vector<8x512xi1>, vector<8x512xi32>
    %c31_i32 = arith.constant 31 : i32
    %199 = vector.broadcast %c31_i32 : i32 to vector<8x512xi32>
    %200 = arith.cmpi eq, %42, %199 : vector<8x512xi32>
    %c31 = arith.constant 31 : index
    %201 = memref.load %arg2[%c31] : memref<48xi32, #tpu.memory_space<smem>>
    %202 = vector.broadcast %201 : i32 to vector<8x512xi32>
    %203 = arith.select %200, %202, %198 : vector<8x512xi1>, vector<8x512xi32>
    %c32_i32 = arith.constant 32 : i32
    %204 = vector.broadcast %c32_i32 : i32 to vector<8x512xi32>
    %205 = arith.cmpi eq, %42, %204 : vector<8x512xi32>
    %c32 = arith.constant 32 : index
    %206 = memref.load %arg2[%c32] : memref<48xi32, #tpu.memory_space<smem>>
    %207 = vector.broadcast %206 : i32 to vector<8x512xi32>
    %208 = arith.select %205, %207, %203 : vector<8x512xi1>, vector<8x512xi32>
    %c33_i32 = arith.constant 33 : i32
    %209 = vector.broadcast %c33_i32 : i32 to vector<8x512xi32>
    %210 = arith.cmpi eq, %42, %209 : vector<8x512xi32>
    %c33 = arith.constant 33 : index
    %211 = memref.load %arg2[%c33] : memref<48xi32, #tpu.memory_space<smem>>
    %212 = vector.broadcast %211 : i32 to vector<8x512xi32>
    %213 = arith.select %210, %212, %208 : vector<8x512xi1>, vector<8x512xi32>
    %c34_i32 = arith.constant 34 : i32
    %214 = vector.broadcast %c34_i32 : i32 to vector<8x512xi32>
    %215 = arith.cmpi eq, %42, %214 : vector<8x512xi32>
    %c34 = arith.constant 34 : index
    %216 = memref.load %arg2[%c34] : memref<48xi32, #tpu.memory_space<smem>>
    %217 = vector.broadcast %216 : i32 to vector<8x512xi32>
    %218 = arith.select %215, %217, %213 : vector<8x512xi1>, vector<8x512xi32>
    %c35_i32 = arith.constant 35 : i32
    %219 = vector.broadcast %c35_i32 : i32 to vector<8x512xi32>
    %220 = arith.cmpi eq, %42, %219 : vector<8x512xi32>
    %c35 = arith.constant 35 : index
    %221 = memref.load %arg2[%c35] : memref<48xi32, #tpu.memory_space<smem>>
    %222 = vector.broadcast %221 : i32 to vector<8x512xi32>
    %223 = arith.select %220, %222, %218 : vector<8x512xi1>, vector<8x512xi32>
    %c36_i32 = arith.constant 36 : i32
    %224 = vector.broadcast %c36_i32 : i32 to vector<8x512xi32>
    %225 = arith.cmpi eq, %42, %224 : vector<8x512xi32>
    %c36 = arith.constant 36 : index
    %226 = memref.load %arg2[%c36] : memref<48xi32, #tpu.memory_space<smem>>
    %227 = vector.broadcast %226 : i32 to vector<8x512xi32>
    %228 = arith.select %225, %227, %223 : vector<8x512xi1>, vector<8x512xi32>
    %c37_i32 = arith.constant 37 : i32
    %229 = vector.broadcast %c37_i32 : i32 to vector<8x512xi32>
    %230 = arith.cmpi eq, %42, %229 : vector<8x512xi32>
    %c37 = arith.constant 37 : index
    %231 = memref.load %arg2[%c37] : memref<48xi32, #tpu.memory_space<smem>>
    %232 = vector.broadcast %231 : i32 to vector<8x512xi32>
    %233 = arith.select %230, %232, %228 : vector<8x512xi1>, vector<8x512xi32>
    %c38_i32 = arith.constant 38 : i32
    %234 = vector.broadcast %c38_i32 : i32 to vector<8x512xi32>
    %235 = arith.cmpi eq, %42, %234 : vector<8x512xi32>
    %c38 = arith.constant 38 : index
    %236 = memref.load %arg2[%c38] : memref<48xi32, #tpu.memory_space<smem>>
    %237 = vector.broadcast %236 : i32 to vector<8x512xi32>
    %238 = arith.select %235, %237, %233 : vector<8x512xi1>, vector<8x512xi32>
    %c39_i32 = arith.constant 39 : i32
    %239 = vector.broadcast %c39_i32 : i32 to vector<8x512xi32>
    %240 = arith.cmpi eq, %42, %239 : vector<8x512xi32>
    %c39 = arith.constant 39 : index
    %241 = memref.load %arg2[%c39] : memref<48xi32, #tpu.memory_space<smem>>
    %242 = vector.broadcast %241 : i32 to vector<8x512xi32>
    %243 = arith.select %240, %242, %238 : vector<8x512xi1>, vector<8x512xi32>
    %c40_i32 = arith.constant 40 : i32
    %244 = vector.broadcast %c40_i32 : i32 to vector<8x512xi32>
    %245 = arith.cmpi eq, %42, %244 : vector<8x512xi32>
    %c40 = arith.constant 40 : index
    %246 = memref.load %arg2[%c40] : memref<48xi32, #tpu.memory_space<smem>>
    %247 = vector.broadcast %246 : i32 to vector<8x512xi32>
    %248 = arith.select %245, %247, %243 : vector<8x512xi1>, vector<8x512xi32>
    %c41_i32 = arith.constant 41 : i32
    %249 = vector.broadcast %c41_i32 : i32 to vector<8x512xi32>
    %250 = arith.cmpi eq, %42, %249 : vector<8x512xi32>
    %c41 = arith.constant 41 : index
    %251 = memref.load %arg2[%c41] : memref<48xi32, #tpu.memory_space<smem>>
    %252 = vector.broadcast %251 : i32 to vector<8x512xi32>
    %253 = arith.select %250, %252, %248 : vector<8x512xi1>, vector<8x512xi32>
    %c42_i32 = arith.constant 42 : i32
    %254 = vector.broadcast %c42_i32 : i32 to vector<8x512xi32>
    %255 = arith.cmpi eq, %42, %254 : vector<8x512xi32>
    %c42 = arith.constant 42 : index
    %256 = memref.load %arg2[%c42] : memref<48xi32, #tpu.memory_space<smem>>
    %257 = vector.broadcast %256 : i32 to vector<8x512xi32>
    %258 = arith.select %255, %257, %253 : vector<8x512xi1>, vector<8x512xi32>
    %c43_i32 = arith.constant 43 : i32
    %259 = vector.broadcast %c43_i32 : i32 to vector<8x512xi32>
    %260 = arith.cmpi eq, %42, %259 : vector<8x512xi32>
    %c43 = arith.constant 43 : index
    %261 = memref.load %arg2[%c43] : memref<48xi32, #tpu.memory_space<smem>>
    %262 = vector.broadcast %261 : i32 to vector<8x512xi32>
    %263 = arith.select %260, %262, %258 : vector<8x512xi1>, vector<8x512xi32>
    %c44_i32 = arith.constant 44 : i32
    %264 = vector.broadcast %c44_i32 : i32 to vector<8x512xi32>
    %265 = arith.cmpi eq, %42, %264 : vector<8x512xi32>
    %c44 = arith.constant 44 : index
    %266 = memref.load %arg2[%c44] : memref<48xi32, #tpu.memory_space<smem>>
    %267 = vector.broadcast %266 : i32 to vector<8x512xi32>
    %268 = arith.select %265, %267, %263 : vector<8x512xi1>, vector<8x512xi32>
    %c45_i32 = arith.constant 45 : i32
    %269 = vector.broadcast %c45_i32 : i32 to vector<8x512xi32>
    %270 = arith.cmpi eq, %42, %269 : vector<8x512xi32>
    %c45 = arith.constant 45 : index
    %271 = memref.load %arg2[%c45] : memref<48xi32, #tpu.memory_space<smem>>
    %272 = vector.broadcast %271 : i32 to vector<8x512xi32>
    %273 = arith.select %270, %272, %268 : vector<8x512xi1>, vector<8x512xi32>
    %c46_i32 = arith.constant 46 : i32
    %274 = vector.broadcast %c46_i32 : i32 to vector<8x512xi32>
    %275 = arith.cmpi eq, %42, %274 : vector<8x512xi32>
    %c46 = arith.constant 46 : index
    %276 = memref.load %arg2[%c46] : memref<48xi32, #tpu.memory_space<smem>>
    %277 = vector.broadcast %276 : i32 to vector<8x512xi32>
    %278 = arith.select %275, %277, %273 : vector<8x512xi1>, vector<8x512xi32>
    %c47_i32 = arith.constant 47 : i32
    %279 = vector.broadcast %c47_i32 : i32 to vector<8x512xi32>
    %280 = arith.cmpi eq, %42, %279 : vector<8x512xi32>
    %c47 = arith.constant 47 : index
    %281 = memref.load %arg2[%c47] : memref<48xi32, #tpu.memory_space<smem>>
    %282 = vector.broadcast %281 : i32 to vector<8x512xi32>
    %283 = arith.select %280, %282, %278 : vector<8x512xi1>, vector<8x512xi32>
    %284 = arith.select %29, %283, %0 : vector<8x512xi1>, vector<8x512xi32>
    %c0_14 = arith.constant 0 : index
    %c0_15 = arith.constant 0 : index
    %285 = vector.load %arg4[%c0_14, %c0_15] : memref<8x512xi32, #tpu.memory_space<vmem>>, vector<8x512xi32>
    tpu.vector_store %arg4[%c0_14, %c0_15], %284 {strides = array<i32>} : memref<8x512xi32, #tpu.memory_space<vmem>>, vector<8x512xi32>,
    return
  }
  func.func @transform_0(%arg0: i32) -> i32 {
    %c0_i32 = arith.constant 0 : i32
    %c0_i32_0 = arith.constant 0 : i32
    return %c0_i32 : i32
  }
  func.func @transform_1(%arg0: i32) -> i32 {
    %c0_i32 = arith.constant 0 : i32
    %c0_i32_0 = arith.constant 0 : i32
    return %c0_i32 : i32
  }
  func.func @transform_2(%arg0: i32) -> (i32, i32) {
    %c0_i32 = arith.constant 0 : i32
    %c0_i32_0 = arith.constant 0 : i32
    return %arg0, %c0_i32 : i32, i32
  }
  func.func @transform_3(%arg0: i32) -> (i32, i32) {
    %c0_i32 = arith.constant 0 : i32
    %c0_i32_0 = arith.constant 0 : i32
    return %arg0, %c0_i32 : i32, i32
  }
}

</mosaic_0001>

<bundles_post_ra>
// kernel: tpu_custom_call.1
= control target key start
LH: loop header
LB: loop body
LE: loop exit
PB: predicated region body
PF: predicated region fallthrough
CT: control target
= control target key end

     0   :  { %9 = vsyncpa [#allocation6], 0  ;;  %s1354_s0 = inlined_call_operand.<no memory space> [shape: s32[1], index: 0, kind: input, shape index: {}]   ;;  %s1355_s1 = inlined_call_operand.vmem [shape: s32[48], index: 1, kind: input, shape index: {}]   ;;  %s1356_s2 = inlined_call_operand.hbm [shape: s32[8,512], index: 2, kind: input, shape index: {}]   ;;  %s1357_s3 = inlined_call_operand.hbm [shape: s32[8,512], index: 3, kind: output, shape index: {}]  }
   0x1   :  { %10 = vsyncpa [#allocation4], 0 }
   0x2   :  { %11 = vsyncpa [#allocation5], 0  ;;  %s20_s14 = sshll.u32 %s1355_s1, 4  ;;  %s21_s14 = int_to_ptr.vmem [resolvable:$true] %s20_s14 }
   0x3   :  { %s701_s15 = scalar_lea.vmem %s21_s14, 16  ;;  %p706_p1 = scmp.lt.s32.totalorder %s21_s14, %s21_s14 }
   0x4   :  { %p702_p0 = scmp.ne.s32.totalorder %s21_s14, %s701_s15  ;;  %p707_p2 = scmp.lt.s32.totalorder %s701_s15, %s701_s15 }
   0x6   :  { %p708_p3 = por %p707_p2, %p706_p1 }
   0x8   :  { %p709_p4 = pnand %p708_p3, %p702_p0 }
   0xa   :  { %712 = shalt.err (!%p709_p4)
}
   0xb   :  { %s759_s16 = smov [#allocation3]   ;;  %s760_s17 = smov [#allocation7]  }
   0xc   :  { %23 = dma.vmem_to_smem %s21_s14, 16, %s759_s16, [#allocation6]  }
   0xd   :  { %s30_s18 = sshll.u32 %s760_s17, 4  ;;  %s31_s18 = int_to_ptr.vmem [resolvable:$true] %s30_s18 }
   0xe   :  { %s721_s19 = scalar_lea.vmem %s31_s18, 512  ;;  %p726_p6 = scmp.lt.s32.totalorder %s31_s18, %s31_s18 }
   0xf   :  { %p722_p5 = scmp.ne.s32.totalorder %s31_s18, %s721_s19  ;;  %p727_p7 = scmp.lt.s32.totalorder %s721_s19, %s721_s19 }
  0x11   :  { %p728_p8 = por %p727_p7, %p726_p6 }
  0x13   :  { %p729_p9 = pnand %p728_p8, %p722_p5 }
  0x15   :  { %732 = shalt.err (!%p729_p9)
}
  0x16   :  { %33 = dma.hbm_to_vmem [thread:$0]  %s1356_s2, 512, %s31_s18, [#allocation4]  }
  0x17   :  { %753 = dma.done.wait [#allocation6], 16  }
  0x18   :  { %754 = vsyncadd [#allocation6], 4294967280 }
  0x19   :  { %755 = dma.done.wait [#allocation4], 512  }
  0x1a   :  { %756 = vsyncadd [#allocation4], 4294966784 }
  0x1b   :  { %40 = sfence }
  0x1c   :  { %v41_v0 = vld [vmem:[#allocation7] sm:$0xff]  ;;  %v42_v1 = vld [vmem:[#allocation7 + $0x8] sm:$0xff]  ;;  %v43_v2 = vld [vmem:[#allocation7 + $0x10] sm:$0xff]  ;;  %v45_v3 = vlaneseq  ;;  %s61_s23 = smul.u32 2654435769, %s1354_s0  ;;  %s791_s24 = sld [smem:[#allocation3]] }
  0x1d   :  { %v44_v4 = vld [vmem:[#allocation7 + $0x18] sm:$0xff]  ;;  %vm119_vm0 = vcmp.gt.s32.totalorder %v41_v0, 0  ;;  %vm121_vm1 = vcmp.gt.s32.totalorder %v42_v1, 0  ;;  %vm123_vm2 = vcmp.gt.s32.totalorder %v43_v2, 0  ;;  %s793_s2 = sld [smem:[#allocation3 + $0x1]] }
  0x1e   :  { %v46_v5 = vshrl.u32 %v45_v3, 7  ;;  %v48_v6 = vand.u32 127, %v45_v3  ;;  %v62_v7 = vstv %s61_s23  ;;  %s795_s25 = sld [smem:[#allocation3 + $0x2]]  ;;  %v120_v12 = vsel %vm119_vm0, %v41_v0, 0 }
  0x1f   :  { %s797_s26 = sld [smem:[#allocation3 + $0x3]]  ;;  %v122_v13 = vsel %vm121_vm1, %v42_v1, 0  ;;  %v124_v14 = vsel %vm123_vm2, %v43_v2, 0  ;;  %vm125_vm3 = vcmp.gt.s32.totalorder %v44_v4, 0  ;;  %vm127_vm4 = vcmp.lt.s32.totalorder %v120_v12, 15 }
  0x20   :  { %v49_v8 = vadd.s32 128, %v48_v6  ;;  %v50_v9 = vadd.s32 256, %v48_v6  ;;  %v51_v10 = vadd.s32 384, %v48_v6  ;;  %v55_v11 = vmul.u32 512, %v46_v5  ;;  %s799_s0 = sld [smem:[#allocation3 + $0x4]] }
  0x21   :  { %s801_s27 = sld [smem:[#allocation3 + $0x5]]  ;;  %v126_v23 = vsel %vm125_vm3, %v44_v4, 0  ;;  %vm129_vm5 = vcmp.lt.s32.totalorder %v122_v13, 15  ;;  %vm131_vm6 = vcmp.lt.s32.totalorder %v124_v14, 15  ;;  %v815_v32 = vsel %vm127_vm4, %v120_v12, 15 }
  0x22   :  { %v56_v15 = vadd.s32 %v55_v11, %v48_v6  ;;  %v57_v16 = vadd.s32 %v55_v11, %v49_v8  ;;  %v58_v17 = vadd.s32 %v55_v11, %v50_v9  ;;  %v59_v18 = vadd.s32 %v55_v11, %v51_v10  ;;  %s803_s28 = sld [smem:[#allocation3 + $0x6]] }
  0x23   :  { %s805_s29 = sld [smem:[#allocation3 + $0x7]]  ;;  %v817_v33 = vsel %vm129_vm5, %v122_v13, 15  ;;  %v819_v34 = vsel %vm131_vm6, %v124_v14, 15  ;;  %vm133_vm7 = vcmp.lt.s32.totalorder %v126_v23, 15  ;;  %v135_v44 = vmul.u32 3, %v815_v32 }
  0x24   :  { %v63_v19 = vxor.u32 %v62_v7, %v56_v15  ;;  %v64_v20 = vxor.u32 %v62_v7, %v57_v16  ;;  %v65_v21 = vxor.u32 %v62_v7, %v58_v17  ;;  %v66_v22 = vxor.u32 %v62_v7, %v59_v18  ;;  %s807_s30 = sld [smem:[#allocation3 + $0x8]] }
  0x25   :  { %s809_s4 = sld [smem:[#allocation3 + $0x9]]  ;;  %v827_v41 = vsel %vm133_vm7, %v126_v23, 15  ;;  %v136_v47 = vmul.u32 3, %v817_v33  ;;  %v137_v48 = vmul.u32 3, %v819_v34  ;;  %v840_v52 = vstv %s791_s24 }
  0x26   :  { %v67_v24 = vshrl.u32 %v63_v19, 16  ;;  %v68_v25 = vshrl.u32 %v64_v20, 16  ;;  %v69_v26 = vshrl.u32 %v65_v21, 16  ;;  %v70_v27 = vshrl.u32 %v66_v22, 16  ;;  %s811_s5 = sld [smem:[#allocation3 + $0xa]] }
  0x27   :  { %s813_s6 = sld [smem:[#allocation3 + $0xb]]  ;;  %v138_v51 = vmul.u32 3, %v827_v41  ;;  %v845_v55 = vstv %s793_s2  ;;  %v848_v56 = vstv %s795_s25  ;;  %v853_v59 = vstv %s797_s26 }
  0x28   :  { %v71_v28 = vxor.u32 %v67_v24, %v63_v19  ;;  %v72_v29 = vxor.u32 %v68_v25, %v64_v20  ;;  %v73_v30 = vxor.u32 %v69_v26, %v65_v21  ;;  %v74_v31 = vxor.u32 %v70_v27, %v66_v22  ;;  %s821_s7 = sld [smem:[#allocation3 + $0xc]] }
  0x29   :  { %s823_s8 = sld [smem:[#allocation3 + $0xd]]  ;;  %v856_v60 = vstv %s799_s0  ;;  %v861_v63 = vstv %s801_s27  ;;  %v864_v0 = vstv %s803_s28  ;;  %v869_v3 = vstv %s805_s29 }
  0x2a   :  { %v75_v35 = vmul.u32 2246822507, %v71_v28  ;;  %v76_v36 = vmul.u32 2246822507, %v72_v29  ;;  %s825_s9 = sld [smem:[#allocation3 + $0xe]]  ;;  %v872_v4 = vstv %s807_s30 }
  0x2b   :  { %v77_v37 = vmul.u32 2246822507, %v73_v30  ;;  %v78_v38 = vmul.u32 2246822507, %v74_v31  ;;  %s829_s10 = sld [smem:[#allocation3 + $0xf]]  ;;  %v881_v7 = vstv %s809_s4 }
  0x2c   :  { %v79_v39 = vshrl.u32 %v75_v35, 13  ;;  %v80_v40 = vshrl.u32 %v76_v36, 13  ;;  %s832_s11 = sld [smem:[#allocation3 + $0x10]]  ;;  %v884_v8 = vstv %s811_s5 }
  0x2d   :  { %v81_v42 = vshrl.u32 %v77_v37, 13  ;;  %v82_v43 = vshrl.u32 %v78_v38, 13  ;;  %s836_s12 = sld [smem:[#allocation3 + $0x11]]  ;;  %v893_v11 = vstv %s813_s6 }
  0x2e   :  { %v83_v45 = vxor.u32 %v79_v39, %v75_v35  ;;  %v84_v46 = vxor.u32 %v80_v40, %v76_v36  ;;  %s842_s13 = sld [smem:[#allocation3 + $0x12]]  ;;  %v896_v12 = vstv %s821_s7 }
  0x2f   :  { %v85_v49 = vxor.u32 %v81_v42, %v77_v37  ;;  %v86_v50 = vxor.u32 %v82_v43, %v78_v38  ;;  %s850_s14 = sld [smem:[#allocation3 + $0x13]]  ;;  %v903_v15 = vstv %s823_s8 }
  0x30   :  { %v87_v53 = vmul.u32 3266489909, %v83_v45  ;;  %v88_v54 = vmul.u32 3266489909, %v84_v46  ;;  %s858_s15 = sld [smem:[#allocation3 + $0x14]]  ;;  %v906_v16 = vstv %s825_s9 }
  0x31   :  { %v89_v57 = vmul.u32 3266489909, %v85_v49  ;;  %v90_v58 = vmul.u32 3266489909, %v86_v50  ;;  %s866_s16 = sld [smem:[#allocation3 + $0x15]]  ;;  %v911_v19 = vstv %s829_s10 }
  0x32   :  { %v91_v61 = vshrl.u32 %v87_v53, 16  ;;  %v92_v62 = vshrl.u32 %v88_v54, 16  ;;  %s874_s17 = sld [smem:[#allocation3 + $0x16]]  ;;  %v914_v20 = vstv %s832_s11 }
  0x33   :  { %v93_v1 = vshrl.u32 %v89_v57, 16  ;;  %v94_v2 = vshrl.u32 %v90_v58, 16  ;;  %s886_s18 = sld [smem:[#allocation3 + $0x17]]  ;;  %v917_v23 = vstv %s836_s12 }
  0x34   :  { %v876_v5 = vxor.u32 %v91_v61, %v87_v53  ;;  %v878_v6 = vxor.u32 %v92_v62, %v88_v54  ;;  %s898_s19 = sld [smem:[#allocation3 + $0x18]]  ;;  %v920_v24 = vstv %s842_s13  ;;  %s761_s13 = smov [#allocation8]  }
  0x35   :  { %v888_v9 = vxor.u32 %v93_v1, %v89_v57  ;;  %v890_v10 = vxor.u32 %v94_v2, %v90_v58  ;;  %v927_v38 = vstv %s850_s14  ;;  %s1134_s1 = sld [smem:[#allocation3 + $0x19]]  ;;  %s637_s14 = sshll.u32 %s761_s13, 4  ;;  %s638_s14 = int_to_ptr.vmem [resolvable:$true] %s637_s14 }
  0x36   :  { %v107_v13 = vshrl.u32 %v876_v5, 24  ;;  %v108_v14 = vshrl.u32 %v878_v6, 24  ;;  %v99_v25 = vand.u32 16777215, %v876_v5  ;;  %v100_v26 = vand.u32 16777215, %v878_v6  ;;  %p738_p11 = scmp.lt.s32.totalorder %s638_s14, %s638_s14 }
  0x37   :  { %v109_v17 = vshrl.u32 %v888_v9, 24  ;;  %v110_v18 = vshrl.u32 %v890_v10, 24  ;;  %v101_v29 = vand.u32 16777215, %v888_v9  ;;  %v102_v30 = vand.u32 16777215, %v890_v10 }
  0x38   :  { %v111_v21 = vmul.u32 3, %v107_v13  ;;  %v112_v22 = vmul.u32 3, %v108_v14  ;;  %v930_v39 = vstv %s858_s15  ;;  %v941_v42 = vstv %s866_s16  ;;  %s1144_s20 = sld [smem:[#allocation3 + $0x1a]]  ;;  %s733_s15 = scalar_lea.vmem %s638_s14, 512 }
  0x39   :  { %v113_v27 = vmul.u32 3, %v109_v17  ;;  %v114_v28 = vmul.u32 3, %v110_v18  ;;  %v944_v43 = vstv %s874_s17  ;;  %v953_v49 = vstv %s886_s18  ;;  %s1154_s21 = sld [smem:[#allocation3 + $0x1b]]  ;;  %p734_p10 = scmp.ne.s32.totalorder %s638_s14, %s733_s15 }
  0x3a   :  { %v115_v31 = vshra.s32 %v111_v21, 8  ;;  %v116_v35 = vshra.s32 %v112_v22, 8  ;;  %v956_v50 = vstv %s898_s19  ;;  %s1164_s22 = sld [smem:[#allocation3 + $0x1c]]  ;;  %p739_p12 = scmp.lt.s32.totalorder %s733_s15, %s733_s15 }
  0x3b   :  { %v117_v36 = vshra.s32 %v113_v27, 8  ;;  %v118_v37 = vshra.s32 %v114_v28, 8  ;;  %s1174_s23 = sld [smem:[#allocation3 + $0x1d]] }
  0x3c   :  { %v934_v40 = vadd.s32 %v135_v44, %v115_v31  ;;  %v938_v41 = vadd.s32 %v136_v47, %v116_v35  ;;  %s1180_s24 = sld [smem:[#allocation3 + $0x1e]]  ;;  %p740_p13 = por %p739_p12, %p738_p11 }
  0x3d   :  { %v948_v45 = vadd.s32 %v137_v48, %v117_v36  ;;  %v950_v46 = vadd.s32 %v138_v51, %v118_v37  ;;  %s1186_s2 = sld [smem:[#allocation3 + $0x1f]] }
  0x3e   :  { %vm143_vm8 = vcmp.eq.s32.totalorder %v934_v40, 0  ;;  %vm144_vm9 = vcmp.eq.s32.totalorder %v938_v41, 0  ;;  %vm153_vm10 = vcmp.eq.s32.totalorder %v934_v40, 1  ;;  %vm154_vm11 = vcmp.eq.s32.totalorder %v938_v41, 1  ;;  %s1192_s25 = sld [smem:[#allocation3 + $0x20]]  ;;  %p741_p0 = pnand %p740_p13, %p734_p10 }
  0x3f   :  { %vm145_vm12 = vcmp.eq.s32.totalorder %v948_v45, 0  ;;  %vm146_vm13 = vcmp.eq.s32.totalorder %v950_v46, 0  ;;  %v149_v32 = vsel %vm143_vm8, %v840_v52, 0  ;;  %v150_v33 = vsel %vm144_vm9, %v840_v52, 0  ;;  %s1202_s26 = sld [smem:[#allocation3 + $0x21]] }
  0x40   :  { %v151_v34 = vsel %vm145_vm12, %v840_v52, 0  ;;  %v152_v44 = vsel %vm146_vm13, %v840_v52, 0  ;;  %vm155_vm14 = vcmp.eq.s32.totalorder %v948_v45, 1  ;;  %vm156_vm15 = vcmp.eq.s32.totalorder %v950_v46, 1  ;;  %s1208_s0 = sld [smem:[#allocation3 + $0x22]] }
  0x41   :  { %v159_v47 = vsel %vm153_vm10, %v845_v55, %v149_v32  ;;  %v160_v48 = vsel %vm154_vm11, %v845_v55, %v150_v33  ;;  %v161_v51 = vsel %vm155_vm14, %v845_v55, %v151_v34  ;;  %v162_v53 = vsel %vm156_vm15, %v845_v55, %v152_v44  ;;  %s1214_s27 = sld [smem:[#allocation3 + $0x23]] }
  0x42   :  { %vm163_vm0 = vcmp.eq.s32.totalorder %v934_v40, 2  ;;  %vm164_vm1 = vcmp.eq.s32.totalorder %v938_v41, 2  ;;  %vm165_vm2 = vcmp.eq.s32.totalorder %v948_v45, 2  ;;  %vm166_vm3 = vcmp.eq.s32.totalorder %v950_v46, 2  ;;  %s1220_s28 = sld [smem:[#allocation3 + $0x24]] }
  0x43   :  { %v169_v52 = vsel %vm163_vm0, %v848_v56, %v159_v47  ;;  %v170_v54 = vsel %vm164_vm1, %v848_v56, %v160_v48  ;;  %v171_v57 = vsel %vm165_vm2, %v848_v56, %v161_v51  ;;  %v172_v58 = vsel %vm166_vm3, %v848_v56, %v162_v53  ;;  %s1230_s29 = sld [smem:[#allocation3 + $0x25]] }
  0x44   :  { %vm173_vm4 = vcmp.eq.s32.totalorder %v934_v40, 3  ;;  %vm174_vm5 = vcmp.eq.s32.totalorder %v938_v41, 3  ;;  %vm175_vm6 = vcmp.eq.s32.totalorder %v948_v45, 3  ;;  %vm176_vm7 = vcmp.eq.s32.totalorder %v950_v46, 3  ;;  %s1236_s30 = sld [smem:[#allocation3 + $0x26]] }
  0x45   :  { %v179_v55 = vsel %vm173_vm4, %v853_v59, %v169_v52  ;;  %v180_v61 = vsel %vm174_vm5, %v853_v59, %v170_v54  ;;  %v181_v62 = vsel %vm175_vm6, %v853_v59, %v171_v57  ;;  %v182_v1 = vsel %vm176_vm7, %v853_v59, %v172_v58  ;;  %s1242_s4 = sld [smem:[#allocation3 + $0x27]] }
  0x46   :  { %vm183_vm8 = vcmp.eq.s32.totalorder %v934_v40, 4  ;;  %vm184_vm9 = vcmp.eq.s32.totalorder %v938_v41, 4  ;;  %vm185_vm10 = vcmp.eq.s32.totalorder %v948_v45, 4  ;;  %vm186_vm11 = vcmp.eq.s32.totalorder %v950_v46, 4  ;;  %s1248_s5 = sld [smem:[#allocation3 + $0x28]] }
  0x47   :  { %v189_v56 = vsel %vm183_vm8, %v856_v60, %v179_v55  ;;  %v190_v2 = vsel %vm184_vm9, %v856_v60, %v180_v61  ;;  %v191_v13 = vsel %vm185_vm10, %v856_v60, %v181_v62  ;;  %v192_v14 = vsel %vm186_vm11, %v856_v60, %v182_v1  ;;  %s1258_s6 = sld [smem:[#allocation3 + $0x29]] }
  0x48   :  { %vm193_vm12 = vcmp.eq.s32.totalorder %v934_v40, 5  ;;  %vm194_vm13 = vcmp.eq.s32.totalorder %v938_v41, 5  ;;  %vm195_vm14 = vcmp.eq.s32.totalorder %v948_v45, 5  ;;  %vm196_vm15 = vcmp.eq.s32.totalorder %v950_v46, 5  ;;  %s1264_s7 = sld [smem:[#allocation3 + $0x2a]] }
  0x49   :  { %v199_v59 = vsel %vm193_vm12, %v861_v63, %v189_v56  ;;  %v200_v17 = vsel %vm194_vm13, %v861_v63, %v190_v2  ;;  %v201_v18 = vsel %vm195_vm14, %v861_v63, %v191_v13  ;;  %v202_v21 = vsel %vm196_vm15, %v861_v63, %v192_v14  ;;  %s1270_s8 = sld [smem:[#allocation3 + $0x2b]] }
  0x4a   :  { %vm203_vm0 = vcmp.eq.s32.totalorder %v934_v40, 6  ;;  %vm204_vm1 = vcmp.eq.s32.totalorder %v938_v41, 6  ;;  %vm205_vm2 = vcmp.eq.s32.totalorder %v948_v45, 6  ;;  %vm206_vm3 = vcmp.eq.s32.totalorder %v950_v46, 6  ;;  %s1276_s9 = sld [smem:[#allocation3 + $0x2c]] }
  0x4b   :  { %v209_v60 = vsel %vm203_vm0, %v864_v0, %v199_v59  ;;  %v210_v22 = vsel %vm204_vm1, %v864_v0, %v200_v17  ;;  %v211_v27 = vsel %vm205_vm2, %v864_v0, %v201_v18  ;;  %v212_v28 = vsel %vm206_vm3, %v864_v0, %v202_v21  ;;  %s1286_s10 = sld [smem:[#allocation3 + $0x2d]] }
  0x4c   :  { %vm213_vm4 = vcmp.eq.s32.totalorder %v934_v40, 7  ;;  %vm214_vm5 = vcmp.eq.s32.totalorder %v938_v41, 7  ;;  %vm215_vm6 = vcmp.eq.s32.totalorder %v948_v45, 7  ;;  %vm216_vm7 = vcmp.eq.s32.totalorder %v950_v46, 7  ;;  %s1292_s11 = sld [smem:[#allocation3 + $0x2e]] }
  0x4d   :  { %v219_v63 = vsel %vm213_vm4, %v869_v3, %v209_v60  ;;  %v220_v31 = vsel %vm214_vm5, %v869_v3, %v210_v22  ;;  %v221_v35 = vsel %vm215_vm6, %v869_v3, %v211_v27  ;;  %v222_v36 = vsel %vm216_vm7, %v869_v3, %v212_v28  ;;  %s1322_s12 = sld [smem:[#allocation3 + $0x2f]] }
  0x4e   :  { %vm223_vm8 = vcmp.eq.s32.totalorder %v934_v40, 8  ;;  %vm224_vm9 = vcmp.eq.s32.totalorder %v938_v41, 8  ;;  %vm225_vm10 = vcmp.eq.s32.totalorder %v948_v45, 8  ;;  %vm226_vm11 = vcmp.eq.s32.totalorder %v950_v46, 8 }
  0x4f   :  { %v229_v0 = vsel %vm223_vm8, %v872_v4, %v219_v63  ;;  %v230_v37 = vsel %vm224_vm9, %v872_v4, %v220_v31  ;;  %v231_v32 = vsel %vm225_vm10, %v872_v4, %v221_v35  ;;  %v232_v33 = vsel %vm226_vm11, %v872_v4, %v222_v36 }
  0x50   :  { %vm233_vm12 = vcmp.eq.s32.totalorder %v934_v40, 9  ;;  %vm234_vm13 = vcmp.eq.s32.totalorder %v938_v41, 9  ;;  %vm235_vm14 = vcmp.eq.s32.totalorder %v948_v45, 9  ;;  %vm236_vm15 = vcmp.eq.s32.totalorder %v950_v46, 9 }
  0x51   :  { %v239_v3 = vsel %vm233_vm12, %v881_v7, %v229_v0  ;;  %v240_v34 = vsel %vm234_vm13, %v881_v7, %v230_v37  ;;  %v241_v44 = vsel %vm235_vm14, %v881_v7, %v231_v32  ;;  %v242_v47 = vsel %vm236_vm15, %v881_v7, %v232_v33 }
  0x52   :  { %vm243_vm0 = vcmp.eq.s32.totalorder %v934_v40, 10  ;;  %vm244_vm1 = vcmp.eq.s32.totalorder %v938_v41, 10  ;;  %vm245_vm2 = vcmp.eq.s32.totalorder %v948_v45, 10  ;;  %vm246_vm3 = vcmp.eq.s32.totalorder %v950_v46, 10 }
  0x53   :  { %v249_v4 = vsel %vm243_vm0, %v884_v8, %v239_v3  ;;  %v250_v48 = vsel %vm244_vm1, %v884_v8, %v240_v34  ;;  %v251_v51 = vsel %vm245_vm2, %v884_v8, %v241_v44  ;;  %v252_v53 = vsel %vm246_vm3, %v884_v8, %v242_v47 }
  0x54   :  { %vm253_vm4 = vcmp.eq.s32.totalorder %v934_v40, 11  ;;  %vm254_vm5 = vcmp.eq.s32.totalorder %v938_v41, 11  ;;  %vm255_vm6 = vcmp.eq.s32.totalorder %v948_v45, 11  ;;  %vm256_vm7 = vcmp.eq.s32.totalorder %v950_v46, 11 }
  0x55   :  { %v259_v7 = vsel %vm253_vm4, %v893_v11, %v249_v4  ;;  %v260_v52 = vsel %vm254_vm5, %v893_v11, %v250_v48  ;;  %v261_v54 = vsel %vm255_vm6, %v893_v11, %v251_v51  ;;  %v262_v57 = vsel %vm256_vm7, %v893_v11, %v252_v53 }
  0x56   :  { %vm263_vm8 = vcmp.eq.s32.totalorder %v934_v40, 12  ;;  %vm264_vm9 = vcmp.eq.s32.totalorder %v938_v41, 12  ;;  %vm265_vm10 = vcmp.eq.s32.totalorder %v948_v45, 12  ;;  %vm266_vm11 = vcmp.eq.s32.totalorder %v950_v46, 12 }
  0x57   :  { %v269_v8 = vsel %vm263_vm8, %v896_v12, %v259_v7  ;;  %v270_v58 = vsel %vm264_vm9, %v896_v12, %v260_v52  ;;  %v271_v55 = vsel %vm265_vm10, %v896_v12, %v261_v54  ;;  %v272_v61 = vsel %vm266_vm11, %v896_v12, %v262_v57 }
  0x58   :  { %vm273_vm12 = vcmp.eq.s32.totalorder %v934_v40, 13  ;;  %vm274_vm13 = vcmp.eq.s32.totalorder %v938_v41, 13  ;;  %vm275_vm14 = vcmp.eq.s32.totalorder %v948_v45, 13  ;;  %vm276_vm15 = vcmp.eq.s32.totalorder %v950_v46, 13 }
  0x59   :  { %v279_v11 = vsel %vm273_vm12, %v903_v15, %v269_v8  ;;  %v280_v62 = vsel %vm274_vm13, %v903_v15, %v270_v58  ;;  %v281_v1 = vsel %vm275_vm14, %v903_v15, %v271_v55  ;;  %v282_v56 = vsel %vm276_vm15, %v903_v15, %v272_v61 }
  0x5a   :  { %vm283_vm0 = vcmp.eq.s32.totalorder %v934_v40, 14  ;;  %vm284_vm1 = vcmp.eq.s32.totalorder %v938_v41, 14  ;;  %vm285_vm2 = vcmp.eq.s32.totalorder %v948_v45, 14  ;;  %vm286_vm3 = vcmp.eq.s32.totalorder %v950_v46, 14 }
  0x5b   :  { %v289_v12 = vsel %vm283_vm0, %v906_v16, %v279_v11  ;;  %v290_v2 = vsel %vm284_vm1, %v906_v16, %v280_v62  ;;  %v291_v13 = vsel %vm285_vm2, %v906_v16, %v281_v1  ;;  %v292_v14 = vsel %vm286_vm3, %v906_v16, %v282_v56 }
  0x5c   :  { %vm293_vm4 = vcmp.eq.s32.totalorder %v934_v40, 15  ;;  %vm294_vm5 = vcmp.eq.s32.totalorder %v938_v41, 15  ;;  %vm295_vm6 = vcmp.eq.s32.totalorder %v948_v45, 15  ;;  %vm296_vm7 = vcmp.eq.s32.totalorder %v950_v46, 15 }
  0x5d   :  { %v299_v15 = vsel %vm293_vm4, %v911_v19, %v289_v12  ;;  %v300_v59 = vsel %vm294_vm5, %v911_v19, %v290_v2  ;;  %v301_v17 = vsel %vm295_vm6, %v911_v19, %v291_v13  ;;  %v302_v18 = vsel %vm296_vm7, %v911_v19, %v292_v14 }
  0x5e   :  { %vm303_vm8 = vcmp.eq.s32.totalorder %v934_v40, 16  ;;  %vm304_vm9 = vcmp.eq.s32.totalorder %v938_v41, 16  ;;  %vm305_vm10 = vcmp.eq.s32.totalorder %v948_v45, 16  ;;  %vm306_vm11 = vcmp.eq.s32.totalorder %v950_v46, 16 }
  0x5f   :  { %v309_v16 = vsel %vm303_vm8, %v914_v20, %v299_v15  ;;  %v310_v21 = vsel %vm304_vm9, %v914_v20, %v300_v59  ;;  %v311_v60 = vsel %vm305_vm10, %v914_v20, %v301_v17  ;;  %v312_v22 = vsel %vm306_vm11, %v914_v20, %v302_v18 }
  0x60   :  { %vm313_vm12 = vcmp.eq.s32.totalorder %v934_v40, 17  ;;  %vm314_vm13 = vcmp.eq.s32.totalorder %v938_v41, 17  ;;  %vm315_vm14 = vcmp.eq.s32.totalorder %v948_v45, 17  ;;  %vm316_vm15 = vcmp.eq.s32.totalorder %v950_v46, 17 }
  0x61   :  { %v319_v19 = vsel %vm313_vm12, %v917_v23, %v309_v16  ;;  %v320_v27 = vsel %vm314_vm13, %v917_v23, %v310_v21  ;;  %v321_v28 = vsel %vm315_vm14, %v917_v23, %v311_v60  ;;  %v322_v63 = vsel %vm316_vm15, %v917_v23, %v312_v22 }
  0x62   :  { %vm323_vm0 = vcmp.eq.s32.totalorder %v934_v40, 18  ;;  %vm324_vm1 = vcmp.eq.s32.totalorder %v938_v41, 18  ;;  %vm325_vm2 = vcmp.eq.s32.totalorder %v948_v45, 18  ;;  %vm326_vm3 = vcmp.eq.s32.totalorder %v950_v46, 18 }
  0x63   :  { %v329_v20 = vsel %vm323_vm0, %v920_v24, %v319_v19  ;;  %v330_v31 = vsel %vm324_vm1, %v920_v24, %v320_v27  ;;  %v331_v35 = vsel %vm325_vm2, %v920_v24, %v321_v28  ;;  %v332_v36 = vsel %vm326_vm3, %v920_v24, %v322_v63 }
  0x64   :  { %vm333_vm4 = vcmp.eq.s32.totalorder %v934_v40, 19  ;;  %vm334_vm5 = vcmp.eq.s32.totalorder %v938_v41, 19  ;;  %vm335_vm6 = vcmp.eq.s32.totalorder %v948_v45, 19  ;;  %vm336_vm7 = vcmp.eq.s32.totalorder %v950_v46, 19 }
  0x65   :  { %v339_v23 = vsel %vm333_vm4, %v927_v38, %v329_v20  ;;  %v340_v0 = vsel %vm334_vm5, %v927_v38, %v330_v31  ;;  %v341_v37 = vsel %vm335_vm6, %v927_v38, %v331_v35  ;;  %v342_v32 = vsel %vm336_vm7, %v927_v38, %v332_v36 }
  0x66   :  { %vm343_vm8 = vcmp.eq.s32.totalorder %v934_v40, 20  ;;  %vm344_vm9 = vcmp.eq.s32.totalorder %v938_v41, 20  ;;  %vm345_vm10 = vcmp.eq.s32.totalorder %v948_v45, 20  ;;  %vm346_vm11 = vcmp.eq.s32.totalorder %v950_v46, 20 }
  0x67   :  { %v349_v24 = vsel %vm343_vm8, %v930_v39, %v339_v23  ;;  %v350_v33 = vsel %vm344_vm9, %v930_v39, %v340_v0  ;;  %v351_v3 = vsel %vm345_vm10, %v930_v39, %v341_v37  ;;  %v352_v34 = vsel %vm346_vm11, %v930_v39, %v342_v32 }
  0x68   :  { %vm353_vm12 = vcmp.eq.s32.totalorder %v934_v40, 21  ;;  %vm354_vm13 = vcmp.eq.s32.totalorder %v938_v41, 21  ;;  %vm355_vm14 = vcmp.eq.s32.totalorder %v948_v45, 21  ;;  %vm356_vm15 = vcmp.eq.s32.totalorder %v950_v46, 21 }
  0x69   :  { %v359_v38 = vsel %vm353_vm12, %v941_v42, %v349_v24  ;;  %v360_v44 = vsel %vm354_vm13, %v941_v42, %v350_v33  ;;  %v361_v47 = vsel %vm355_vm14, %v941_v42, %v351_v3  ;;  %v362_v4 = vsel %vm356_vm15, %v941_v42, %v352_v34 }
  0x6a   :  { %vm363_vm0 = vcmp.eq.s32.totalorder %v934_v40, 22  ;;  %vm364_vm1 = vcmp.eq.s32.totalorder %v938_v41, 22  ;;  %vm365_vm2 = vcmp.eq.s32.totalorder %v948_v45, 22  ;;  %vm366_vm3 = vcmp.eq.s32.totalorder %v950_v46, 22 }
  0x6b   :  { %v369_v39 = vsel %vm363_vm0, %v944_v43, %v359_v38  ;;  %v370_v48 = vsel %vm364_vm1, %v944_v43, %v360_v44  ;;  %v371_v51 = vsel %vm365_vm2, %v944_v43, %v361_v47  ;;  %v372_v53 = vsel %vm366_vm3, %v944_v43, %v362_v4 }
  0x6c   :  { %vm373_vm4 = vcmp.eq.s32.totalorder %v934_v40, 23  ;;  %vm374_vm5 = vcmp.eq.s32.totalorder %v938_v41, 23  ;;  %vm375_vm6 = vcmp.eq.s32.totalorder %v948_v45, 23  ;;  %vm376_vm7 = vcmp.eq.s32.totalorder %v950_v46, 23 }
  0x6d   :  { %v379_v42 = vsel %vm373_vm4, %v953_v49, %v369_v39  ;;  %v380_v7 = vsel %vm374_vm5, %v953_v49, %v370_v48  ;;  %v381_v52 = vsel %vm375_vm6, %v953_v49, %v371_v51  ;;  %v382_v54 = vsel %vm376_vm7, %v953_v49, %v372_v53 }
  0x6e   :  { %vm383_vm8 = vcmp.eq.s32.totalorder %v934_v40, 24  ;;  %vm384_vm9 = vcmp.eq.s32.totalorder %v938_v41, 24  ;;  %vm385_vm10 = vcmp.eq.s32.totalorder %v948_v45, 24  ;;  %vm386_vm11 = vcmp.eq.s32.totalorder %v950_v46, 24 }
  0x6f   :  { %v389_v43 = vsel %vm383_vm8, %v956_v50, %v379_v42  ;;  %v390_v57 = vsel %vm384_vm9, %v956_v50, %v380_v7  ;;  %v391_v8 = vsel %vm385_vm10, %v956_v50, %v381_v52  ;;  %v392_v58 = vsel %vm386_vm11, %v956_v50, %v382_v54 }
  0x70   :  { %vm393_vm12 = vcmp.eq.s32.totalorder %v934_v40, 25  ;;  %vm394_vm13 = vcmp.eq.s32.totalorder %v938_v41, 25  ;;  %vm395_vm14 = vcmp.eq.s32.totalorder %v948_v45, 25  ;;  %vm396_vm15 = vcmp.eq.s32.totalorder %v950_v46, 25 }
  0x71   :  { %v398_v49 = vstv %s1134_s1  ;;  %vm403_vm0 = vcmp.eq.s32.totalorder %v934_v40, 26  ;;  %vm404_vm1 = vcmp.eq.s32.totalorder %v938_v41, 26  ;;  %vm405_vm2 = vcmp.eq.s32.totalorder %v948_v45, 26 }
  0x72   :  { %v399_v55 = vsel %vm393_vm12, %v398_v49, %v389_v43  ;;  %v400_v50 = vsel %vm394_vm13, %v398_v49, %v390_v57  ;;  %v401_v61 = vsel %vm395_vm14, %v398_v49, %v391_v8  ;;  %v402_v11 = vsel %vm396_vm15, %v398_v49, %v392_v58 }
  0x73   :  { %vm406_vm3 = vcmp.eq.s32.totalorder %v950_v46, 26  ;;  %v408_v62 = vstv %s1144_s20  ;;  %vm413_vm4 = vcmp.eq.s32.totalorder %v934_v40, 27  ;;  %vm414_vm5 = vcmp.eq.s32.totalorder %v938_v41, 27 }
  0x74   :  { %v409_v1 = vsel %vm403_vm0, %v408_v62, %v399_v55  ;;  %v410_v56 = vsel %vm404_vm1, %v408_v62, %v400_v50  ;;  %v411_v12 = vsel %vm405_vm2, %v408_v62, %v401_v61  ;;  %v412_v2 = vsel %vm406_vm3, %v408_v62, %v402_v11 }
  0x75   :  { %vm415_vm6 = vcmp.eq.s32.totalorder %v948_v45, 27  ;;  %vm416_vm7 = vcmp.eq.s32.totalorder %v950_v46, 27  ;;  %v418_v13 = vstv %s1154_s21  ;;  %vm423_vm8 = vcmp.eq.s32.totalorder %v934_v40, 28 }
  0x76   :  { %v419_v14 = vsel %vm413_vm4, %v418_v13, %v409_v1  ;;  %v420_v15 = vsel %vm414_vm5, %v418_v13, %v410_v56  ;;  %v421_v59 = vsel %vm415_vm6, %v418_v13, %v411_v12  ;;  %v422_v17 = vsel %vm416_vm7, %v418_v13, %v412_v2 }
  0x77   :  { %vm424_vm9 = vcmp.eq.s32.totalorder %v938_v41, 28  ;;  %vm425_vm10 = vcmp.eq.s32.totalorder %v948_v45, 28  ;;  %vm426_vm11 = vcmp.eq.s32.totalorder %v950_v46, 28  ;;  %v428_v18 = vstv %s1164_s22 }
  0x78   :  { %v429_v16 = vsel %vm423_vm8, %v428_v18, %v419_v14  ;;  %v430_v21 = vsel %vm424_vm9, %v428_v18, %v420_v15  ;;  %v431_v60 = vsel %vm425_vm10, %v428_v18, %v421_v59  ;;  %v432_v22 = vsel %vm426_vm11, %v428_v18, %v422_v17 }
  0x79   :  { %vm433_vm12 = vcmp.eq.s32.totalorder %v934_v40, 29  ;;  %vm434_vm13 = vcmp.eq.s32.totalorder %v938_v41, 29  ;;  %vm435_vm14 = vcmp.eq.s32.totalorder %v948_v45, 29  ;;  %vm436_vm15 = vcmp.eq.s32.totalorder %v950_v46, 29 }
  0x7a   :  { %v438_v19 = vstv %s1174_s23  ;;  %vm443_vm0 = vcmp.eq.s32.totalorder %v934_v40, 30  ;;  %vm444_vm1 = vcmp.eq.s32.totalorder %v938_v41, 30  ;;  %vm445_vm2 = vcmp.eq.s32.totalorder %v948_v45, 30 }
  0x7b   :  { %v439_v27 = vsel %vm433_vm12, %v438_v19, %v429_v16  ;;  %v440_v28 = vsel %vm434_vm13, %v438_v19, %v430_v21  ;;  %v441_v63 = vsel %vm435_vm14, %v438_v19, %v431_v60  ;;  %v442_v20 = vsel %vm436_vm15, %v438_v19, %v432_v22 }
  0x7c   :  { %vm446_vm3 = vcmp.eq.s32.totalorder %v950_v46, 30  ;;  %v448_v31 = vstv %s1180_s24  ;;  %vm453_vm4 = vcmp.eq.s32.totalorder %v934_v40, 31  ;;  %vm454_vm5 = vcmp.eq.s32.totalorder %v938_v41, 31 }
  0x7d   :  { %v449_v35 = vsel %vm443_vm0, %v448_v31, %v439_v27  ;;  %v450_v36 = vsel %vm444_vm1, %v448_v31, %v440_v28  ;;  %v451_v23 = vsel %vm445_vm2, %v448_v31, %v441_v63  ;;  %v452_v0 = vsel %vm446_vm3, %v448_v31, %v442_v20 }
  0x7e   :  { %vm455_vm6 = vcmp.eq.s32.totalorder %v948_v45, 31  ;;  %vm456_vm7 = vcmp.eq.s32.totalorder %v950_v46, 31  ;;  %v458_v37 = vstv %s1186_s2  ;;  %vm463_vm8 = vcmp.eq.s32.totalorder %v934_v40, 32 }
  0x7f   :  { %v459_v32 = vsel %vm453_vm4, %v458_v37, %v449_v35  ;;  %v460_v24 = vsel %vm454_vm5, %v458_v37, %v450_v36  ;;  %v461_v33 = vsel %vm455_vm6, %v458_v37, %v451_v23  ;;  %v462_v3 = vsel %vm456_vm7, %v458_v37, %v452_v0 }
  0x80   :  { %vm464_vm9 = vcmp.eq.s32.totalorder %v938_v41, 32  ;;  %vm465_vm10 = vcmp.eq.s32.totalorder %v948_v45, 32  ;;  %vm466_vm11 = vcmp.eq.s32.totalorder %v950_v46, 32  ;;  %v468_v34 = vstv %s1192_s25 }
  0x81   :  { %v469_v38 = vsel %vm463_vm8, %v468_v34, %v459_v32  ;;  %v470_v44 = vsel %vm464_vm9, %v468_v34, %v460_v24  ;;  %v471_v47 = vsel %vm465_vm10, %v468_v34, %v461_v33  ;;  %v472_v4 = vsel %vm466_vm11, %v468_v34, %v462_v3 }
  0x82   :  { %vm473_vm12 = vcmp.eq.s32.totalorder %v934_v40, 33  ;;  %vm474_vm13 = vcmp.eq.s32.totalorder %v938_v41, 33  ;;  %vm475_vm14 = vcmp.eq.s32.totalorder %v948_v45, 33  ;;  %vm476_vm15 = vcmp.eq.s32.totalorder %v950_v46, 33 }
  0x83   :  { %v478_v39 = vstv %s1202_s26  ;;  %vm483_vm0 = vcmp.eq.s32.totalorder %v934_v40, 34  ;;  %vm484_vm1 = vcmp.eq.s32.totalorder %v938_v41, 34  ;;  %vm485_vm2 = vcmp.eq.s32.totalorder %v948_v45, 34 }
  0x84   :  { %v479_v48 = vsel %vm473_vm12, %v478_v39, %v469_v38  ;;  %v480_v51 = vsel %vm474_vm13, %v478_v39, %v470_v44  ;;  %v481_v53 = vsel %vm475_vm14, %v478_v39, %v471_v47  ;;  %v482_v42 = vsel %vm476_vm15, %v478_v39, %v472_v4 }
  0x85   :  { %vm486_vm3 = vcmp.eq.s32.totalorder %v950_v46, 34  ;;  %v488_v7 = vstv %s1208_s0  ;;  %vm493_vm4 = vcmp.eq.s32.totalorder %v934_v40, 35  ;;  %vm494_vm5 = vcmp.eq.s32.totalorder %v938_v41, 35 }
  0x86   :  { %v489_v52 = vsel %vm483_vm0, %v488_v7, %v479_v48  ;;  %v490_v54 = vsel %vm484_vm1, %v488_v7, %v480_v51  ;;  %v491_v43 = vsel %vm485_vm2, %v488_v7, %v481_v53  ;;  %v492_v57 = vsel %vm486_vm3, %v488_v7, %v482_v42 }
  0x87   :  { %vm495_vm6 = vcmp.eq.s32.totalorder %v948_v45, 35  ;;  %vm496_vm7 = vcmp.eq.s32.totalorder %v950_v46, 35  ;;  %v498_v8 = vstv %s1214_s27  ;;  %vm503_vm8 = vcmp.eq.s32.totalorder %v934_v40, 36 }
  0x88   :  { %v499_v58 = vsel %vm493_vm4, %v498_v8, %v489_v52  ;;  %v500_v49 = vsel %vm494_vm5, %v498_v8, %v490_v54  ;;  %v501_v55 = vsel %vm495_vm6, %v498_v8, %v491_v43  ;;  %v502_v50 = vsel %vm496_vm7, %v498_v8, %v492_v57 }
  0x89   :  { %vm504_vm9 = vcmp.eq.s32.totalorder %v938_v41, 36  ;;  %vm505_vm10 = vcmp.eq.s32.totalorder %v948_v45, 36  ;;  %vm506_vm11 = vcmp.eq.s32.totalorder %v950_v46, 36  ;;  %v508_v61 = vstv %s1220_s28 }
  0x8a   :  { %v509_v11 = vsel %vm503_vm8, %v508_v61, %v499_v58  ;;  %v510_v62 = vsel %vm504_vm9, %v508_v61, %v500_v49  ;;  %v511_v1 = vsel %vm505_vm10, %v508_v61, %v501_v55  ;;  %v512_v56 = vsel %vm506_vm11, %v508_v61, %v502_v50 }
  0x8b   :  { %vm513_vm12 = vcmp.eq.s32.totalorder %v934_v40, 37  ;;  %vm514_vm13 = vcmp.eq.s32.totalorder %v938_v41, 37  ;;  %vm515_vm14 = vcmp.eq.s32.totalorder %v948_v45, 37  ;;  %vm516_vm15 = vcmp.eq.s32.totalorder %v950_v46, 37 }
  0x8c   :  { %v518_v12 = vstv %s1230_s29  ;;  %vm523_vm0 = vcmp.eq.s32.totalorder %v934_v40, 38  ;;  %vm524_vm1 = vcmp.eq.s32.totalorder %v938_v41, 38  ;;  %vm525_vm2 = vcmp.eq.s32.totalorder %v948_v45, 38 }
  0x8d   :  { %v519_v2 = vsel %vm513_vm12, %v518_v12, %v509_v11  ;;  %v520_v13 = vsel %vm514_vm13, %v518_v12, %v510_v62  ;;  %v521_v14 = vsel %vm515_vm14, %v518_v12, %v511_v1  ;;  %v522_v15 = vsel %vm516_vm15, %v518_v12, %v512_v56  ;;  %v697_v56 = vld [vmem:[#allocation7] sm:$0xff] }
  0x8e   :  { %vm526_vm3 = vcmp.eq.s32.totalorder %v950_v46, 38  ;;  %v528_v59 = vstv %s1236_s30  ;;  %vm533_vm4 = vcmp.eq.s32.totalorder %v934_v40, 39  ;;  %vm534_vm5 = vcmp.eq.s32.totalorder %v938_v41, 39 }
  0x8f   :  { %v529_v17 = vsel %vm523_vm0, %v528_v59, %v519_v2  ;;  %v530_v18 = vsel %vm524_vm1, %v528_v59, %v520_v13  ;;  %v531_v16 = vsel %vm525_vm2, %v528_v59, %v521_v14  ;;  %v532_v21 = vsel %vm526_vm3, %v528_v59, %v522_v15  ;;  %v699_v2 = vld [vmem:[#allocation7 + $0x10] sm:$0xff]  ;;  %v700_v13 = vld [vmem:[#allocation7 + $0x18] sm:$0xff] }
  0x90   :  { %vm535_vm6 = vcmp.eq.s32.totalorder %v948_v45, 39  ;;  %vm536_vm7 = vcmp.eq.s32.totalorder %v950_v46, 39  ;;  %v538_v60 = vstv %s1242_s4  ;;  %vm543_vm8 = vcmp.eq.s32.totalorder %v934_v40, 40 }
  0x91   :  { %v539_v22 = vsel %vm533_vm4, %v538_v60, %v529_v17  ;;  %v540_v19 = vsel %vm534_vm5, %v538_v60, %v530_v18  ;;  %v541_v27 = vsel %vm535_vm6, %v538_v60, %v531_v16  ;;  %v542_v28 = vsel %vm536_vm7, %v538_v60, %v532_v21 }
  0x92   :  { %vm544_vm9 = vcmp.eq.s32.totalorder %v938_v41, 40  ;;  %vm545_vm10 = vcmp.eq.s32.totalorder %v948_v45, 40  ;;  %vm546_vm11 = vcmp.eq.s32.totalorder %v950_v46, 40  ;;  %v548_v63 = vstv %s1248_s5 }
  0x93   :  { %v549_v20 = vsel %vm543_vm8, %v548_v63, %v539_v22  ;;  %v550_v31 = vsel %vm544_vm9, %v548_v63, %v540_v19  ;;  %v551_v35 = vsel %vm545_vm10, %v548_v63, %v541_v27  ;;  %v552_v36 = vsel %vm546_vm11, %v548_v63, %v542_v28 }
  0x94   :  { %vm553_vm12 = vcmp.eq.s32.totalorder %v934_v40, 41  ;;  %vm554_vm13 = vcmp.eq.s32.totalorder %v938_v41, 41  ;;  %vm555_vm14 = vcmp.eq.s32.totalorder %v948_v45, 41  ;;  %vm556_vm15 = vcmp.eq.s32.totalorder %v950_v46, 41 }
  0x95   :  { %v558_v23 = vstv %s1258_s6  ;;  %vm563_vm0 = vcmp.eq.s32.totalorder %v934_v40, 42  ;;  %vm564_vm1 = vcmp.eq.s32.totalorder %v938_v41, 42  ;;  %vm565_vm2 = vcmp.eq.s32.totalorder %v948_v45, 42 }
  0x96   :  { %v559_v0 = vsel %vm553_vm12, %v558_v23, %v549_v20  ;;  %v560_v37 = vsel %vm554_vm13, %v558_v23, %v550_v31  ;;  %v561_v32 = vsel %vm555_vm14, %v558_v23, %v551_v35  ;;  %v562_v24 = vsel %vm556_vm15, %v558_v23, %v552_v36 }
  0x97   :  { %vm566_vm3 = vcmp.eq.s32.totalorder %v950_v46, 42  ;;  %v568_v33 = vstv %s1264_s7  ;;  %vm573_vm4 = vcmp.eq.s32.totalorder %v934_v40, 43  ;;  %vm574_vm5 = vcmp.eq.s32.totalorder %v938_v41, 43 }
  0x98   :  { %v569_v3 = vsel %vm563_vm0, %v568_v33, %v559_v0  ;;  %v570_v34 = vsel %vm564_vm1, %v568_v33, %v560_v37  ;;  %v571_v38 = vsel %vm565_vm2, %v568_v33, %v561_v32  ;;  %v572_v44 = vsel %vm566_vm3, %v568_v33, %v562_v24 }
  0x99   :  { %vm1296_vm6 = vcmp.lt.s32.totalorder %v99_v25, 8388608  ;;  %vm1302_vm7 = vcmp.lt.s32.totalorder %v100_v26, 8388608  ;;  %vm1308_vm8 = vcmp.lt.s32.totalorder %v101_v29, 8388608  ;;  %vm1314_vm9 = vcmp.lt.s32.totalorder %v102_v30, 8388608 }
  0x9a   :  { %vm575_vm10 = vcmp.eq.s32.totalorder %v948_v45, 43  ;;  %vm576_vm11 = vcmp.eq.s32.totalorder %v950_v46, 43  ;;  %v578_v6 = vstv %s1270_s8  ;;  %vm583_vm12 = vcmp.eq.s32.totalorder %v934_v40, 44 }
  0x9b   :  { %v579_v25 = vsel %vm573_vm4, %v578_v6, %v569_v3  ;;  %v580_v26 = vsel %vm574_vm5, %v578_v6, %v570_v34  ;;  %v581_v9 = vsel %vm575_vm10, %v578_v6, %v571_v38  ;;  %v582_v29 = vsel %vm576_vm11, %v578_v6, %v572_v44 }
  0x9c   :  { %vm584_vm13 = vcmp.eq.s32.totalorder %v938_v41, 44  ;;  %vm585_vm14 = vcmp.eq.s32.totalorder %v948_v45, 44  ;;  %vm586_vm15 = vcmp.eq.s32.totalorder %v950_v46, 44  ;;  %v588_v10 = vstv %s1276_s9 }
  0x9d   :  { %v589_v30 = vsel %vm583_vm12, %v588_v10, %v579_v25  ;;  %v590_v48 = vsel %vm584_vm13, %v588_v10, %v580_v26  ;;  %v591_v51 = vsel %vm585_vm14, %v588_v10, %v581_v9  ;;  %v592_v53 = vsel %vm586_vm15, %v588_v10, %v582_v29 }
  0x9e   :  { %vm593_vm0 = vcmp.eq.s32.totalorder %v934_v40, 45  ;;  %vm594_vm1 = vcmp.eq.s32.totalorder %v938_v41, 45  ;;  %vm595_vm2 = vcmp.eq.s32.totalorder %v948_v45, 45  ;;  %vm596_vm3 = vcmp.eq.s32.totalorder %v950_v46, 45 }
  0x9f   :  { %v598_v42 = vstv %s1286_s10  ;;  %vm603_vm4 = vcmp.eq.s32.totalorder %v934_v40, 46  ;;  %vm604_vm5 = vcmp.eq.s32.totalorder %v938_v41, 46  ;;  %vm605_vm10 = vcmp.eq.s32.totalorder %v948_v45, 46 }
  0xa0   :  { %v599_v7 = vsel %vm593_vm0, %v598_v42, %v589_v30  ;;  %v600_v52 = vsel %vm594_vm1, %v598_v42, %v590_v48  ;;  %v601_v54 = vsel %vm595_vm2, %v598_v42, %v591_v51  ;;  %v602_v43 = vsel %vm596_vm3, %v598_v42, %v592_v53 }
  0xa1   :  { %vm606_vm11 = vcmp.eq.s32.totalorder %v950_v46, 46  ;;  %v608_v57 = vstv %s1292_s11  ;;  %vm613_vm12 = vcmp.eq.s32.totalorder %v934_v40, 47  ;;  %vm614_vm13 = vcmp.eq.s32.totalorder %v938_v41, 47  ;;  %v698_v41 = vld [vmem:[#allocation7 + $0x8] sm:$0xff] }
  0xa2   :  { %v609_v8 = vsel %vm603_vm4, %v608_v57, %v599_v7  ;;  %v610_v58 = vsel %vm604_vm5, %v608_v57, %v600_v52  ;;  %v611_v49 = vsel %vm605_vm10, %v608_v57, %v601_v54  ;;  %v612_v55 = vsel %vm606_vm11, %v608_v57, %v602_v43 }
  0xa3   :  { %vm615_vm14 = vcmp.eq.s32.totalorder %v948_v45, 47  ;;  %vm616_vm15 = vcmp.eq.s32.totalorder %v950_v46, 47  ;;  %v618_v50 = vstv %s1322_s12 }
  0xa4   :  { %v619_v61 = vsel %vm613_vm12, %v618_v50, %v609_v8  ;;  %v620_v11 = vsel %vm614_vm13, %v618_v50, %v610_v58  ;;  %v621_v62 = vsel %vm615_vm14, %v618_v50, %v611_v49  ;;  %v622_v1 = vsel %vm616_vm15, %v618_v50, %v612_v55 }
  0xa5   :  { %v623_v40 = vsel %vm1296_vm6, %v619_v61, %v697_v56  ;;  %v624_v12 = vsel %vm1302_vm7, %v620_v11, %v698_v41  ;;  %v625_v45 = vsel %vm1308_vm8, %v621_v62, %v699_v2  ;;  %v626_v46 = vsel %vm1314_vm9, %v622_v1, %v700_v13 }
  0xa6   :  { %627 = vst [vmem:[#allocation8] sm:$0xff] %v623_v40  ;;  %628 = vst [vmem:[#allocation8 + $0x8] sm:$0xff] %v624_v12 }
  0xa7   :  { %629 = vst [vmem:[#allocation8 + $0x10] sm:$0xff] %v625_v45  ;;  %630 = vst [vmem:[#allocation8 + $0x18] sm:$0xff] %v626_v46 }
  0xa8   :  { %744 = shalt.err (!%p741_p0)
}
  0xa9   :  { %640 = dma.vmem_to_hbm [thread:$0]  %s638_s14, 512, %s1357_s3, [#allocation5]  }
  0xaa   :  { %757 = dma.done.wait [#allocation5], 512  }
  0xab   :  { %758 = vsyncadd [#allocation5], 4294966784 }
  0xac   :  { %644 = vsyncpa [#allocation4], 1 }
  0xad   :  { %645 = vsyncpa [#allocation5], 1 }
  0xae   :  { %646 = vsyncpa [#allocation6], 1 }

</bundles_post_ra>
